<compile_context>
chip_gen: v6e
topology: v6e:2x2x1
jax: 0.10.0
libtpu: 0.0.40
codegen_flags: <defaults>
</compile_context>

<pallas_src>
import functools

import numpy as np
import jax
import jax.numpy as jnp
from jax.experimental import pallas as pl
from jax.experimental.pallas import tpu as pltpu


# --------------------------------- kernel ---------------------------------- #

def _mha_map_kernel(*refs, num_heads, hw, has_mask):
    if has_mask:
        (q_ref, k_ref, wq_ref, bq_ref, wk_ref, bk_ref, mask_ref,
         out_ref, logits_ref) = refs
    else:
        (q_ref, k_ref, wq_ref, bq_ref, wk_ref, bk_ref,
         out_ref, logits_ref) = refs

    bb, q_len, d = q_ref.shape
    hd_total = wq_ref.shape[1]
    hd = hd_total // num_heads
    hwp = k_ref.shape[2]
    pad = hwp != hw
    minus_inf = jnp.float32(float("-inf"))

    # Query projection: ONE (Bblk*Q, D) x (D, Hd) matmul; normalize_fact already
    # folded into wq/bq at parameter-prep time.
    q2 = q_ref[...].reshape(bb * q_len, d)
    qp = jnp.dot(q2, wq_ref[...], preferred_element_type=jnp.float32) + bq_ref[...]
    # Per-head contribution of the key bias bk:  c_n = sum_c qp[:, n, c] * bk[n, c]
    qp_bk = qp * bk_ref[...]                                     # (Bblk*Q, Hd)

    # Additive 0 / -inf masks, hoisted out of the per-head loop.
    if pad:
        lane = jax.lax.broadcasted_iota(jnp.int32, (1, hwp), 1)
        pad_row = jnp.where(lane >= hw, minus_inf, jnp.float32(0.0))      # (1, HWp)
    if has_mask:
        addm = jnp.where(mask_ref[...] > 0, minus_inf, jnp.float32(0.0))  # (Bblk,1,HWp)
        if pad:
            addm = addm + pad_row

    # Re-associated per-head query-side factors (tiny matmuls, contraction = hd).
    a_heads = []
    c_heads = []
    for n in range(num_heads):
        sl = slice(n * hd, (n + 1) * hd)
        a_heads.append(jnp.dot(qp[:, sl], wk_ref[sl, :],
                               preferred_element_type=jnp.float32))       # (Bblk*Q, D)
        c_heads.append(jnp.sum(qp_bk[:, sl], axis=-1, keepdims=True))     # (Bblk*Q, 1)

    # Big matmuls: full contraction depth D, results written straight into
    # lane-aligned slices of the VMEM scratch slab (PyTorch flatten(2) order).
    for b in range(bb):
        k_b = k_ref[b]                                                    # (D, HWp)
        if has_mask:
            add_b = addm[b]
        elif pad:
            add_b = pad_row
        else:
            add_b = None
        rows = slice(b * q_len, (b + 1) * q_len)
        for n in range(num_heads):
            logit = (jnp.dot(a_heads[n][rows, :], k_b,
                             preferred_element_type=jnp.float32)
                     + c_heads[n][rows, :])                               # (Q, HWp)
            if add_b is not None:
                logit = logit + add_b
            logits_ref[b, :, n * hwp:(n + 1) * hwp] = logit

    # Joint softmax over flatten(2) == heads x spatial (lane-axis reduction),
    # one lane-dense output store.
    logits = logits_ref[...]                                              # (Bblk,Q,Nh*HWp)
    m = jnp.max(logits, axis=-1, keepdims=True)
    e = jnp.exp(logits - m)
    s = jnp.sum(e, axis=-1, keepdims=True)
    r = pl.reciprocal(s, approx=True)
    r = r * (2.0 - s * r)                                # one Newton-Raphson step
    out_ref[...] = e * r


# ------------------------------ host-side glue ----------------------------- #

def prepare_mh_attention_params(params, num_heads):
    """One-time parameter prep (hoisted out of the per-call hot path):
    transpose + cast to f32 and fold normalize_fact into the query weights."""
    Hd, D = params["wq"].shape
    assert Hd % num_heads == 0
    fact = float(Hd / num_heads) ** (-0.5)
    return {
        "wq_t": (jnp.transpose(params["wq"]) * fact).astype(jnp.float32),  # (D, Hd)
        "bq": (params["bq"] * fact).reshape(1, Hd).astype(jnp.float32),    # (1, Hd)
        "wk": params["wk"].astype(jnp.float32),                            # (Hd, D)
        "bk": params["bk"].reshape(1, Hd).astype(jnp.float32),             # (1, Hd)
    }


def _pick_block_b(batch):
    """Largest divisor of `batch` giving >= 2 grid steps (both v7x TCs busy)."""
    if batch <= 1:
        return 1
    for cand in range(batch // 2, 0, -1):
        if batch % cand == 0:
            return cand
    return 1


def _vmem_limit_bytes(block_b, q_len, d, hd_total, num_heads, hwp, has_mask):
    blk = 4 * (block_b * q_len * d
               + block_b * d * hwp
               + block_b * q_len * num_heads * hwp)
    if has_mask:
        blk += block_b * hwp                       # int8 mask block
    par = 4 * (d * hd_total + hd_total + hd_total * d + hd_total)
    scratch = 4 * block_b * q_len * num_heads * hwp
    need = 2 * blk + 2 * par + scratch             # double-buffered blocks/params
    return int(min(max(2 * need, 32 * (1 << 20)), 128 * (1 << 20)))


def mh_attention_map(prepped, q, k, mask=None, *, num_heads, block_b=None):
    """MHAttentionMap.forward.

    prepped: output of prepare_mh_attention_params
    q:    (B, Q, query_dim) float32
    k:    (B, query_dim, H, W) float32
    mask: optional (B, H, W) bool, True = masked
    returns (B, Q, num_heads, H, W) attention weights (softmax over heads*H*W).
    """
    B, Q, D = q.shape
    Hd = prepped["wq_t"].shape[1]
    assert Hd % num_heads == 0
    H, W = k.shape[-2], k.shape[-1]
    HW = H * W
    HWp = -(-HW // 128) * 128                      # pad spatial axis to lane width

    q32 = q.astype(jnp.float32)
    k_flat = k.reshape(B, D, HW).astype(jnp.float32)
    if HWp != HW:
        k_flat = jnp.pad(k_flat, ((0, 0), (0, 0), (0, HWp - HW)))

    if block_b is None:
        block_b = _pick_block_b(B)
    assert B % block_b == 0
    grid = (B // block_b,)

    args = [q32, k_flat, prepped["wq_t"], prepped["bq"], prepped["wk"], prepped["bk"]]
    # Weight specs are constant across the grid; on v7x with large blocks they
    # could additionally be single-buffered (pipeline_mode=pl.Buffered(1)).
    in_specs = [
        pl.BlockSpec((block_b, Q, D), lambda b: (b, 0, 0)),
        pl.BlockSpec((block_b, D, HWp), lambda b: (b, 0, 0)),
        pl.BlockSpec((D, Hd), lambda b: (0, 0)),
        pl.BlockSpec((1, Hd), lambda b: (0, 0)),
        pl.BlockSpec((Hd, D), lambda b: (0, 0)),
        pl.BlockSpec((1, Hd), lambda b: (0, 0)),
    ]

    has_mask = mask is not None
    if has_mask:
        m = mask.reshape(B, 1, HW).astype(jnp.int8)
        if HWp != HW:
            m = jnp.pad(m, ((0, 0), (0, 0), (0, HWp - HW)))
        args.append(m)
        in_specs.append(pl.BlockSpec((block_b, 1, HWp), lambda b: (b, 0, 0)))

    kernel = functools.partial(_mha_map_kernel, num_heads=num_heads,
                               hw=HW, has_mask=has_mask)

    out = pl.pallas_call(
        kernel,
        out_shape=jax.ShapeDtypeStruct((B, Q, num_heads * HWp), jnp.float32),
        grid=grid,
        in_specs=in_specs,
        out_specs=pl.BlockSpec((block_b, Q, num_heads * HWp), lambda b: (b, 0, 0)),
        scratch_shapes=[pltpu.VMEM((block_b, Q, num_heads * HWp), jnp.float32)],
        compiler_params=pltpu.CompilerParams(
            dimension_semantics=("parallel",),
            vmem_limit_bytes=_vmem_limit_bytes(block_b, Q, D, Hd, num_heads,
                                               HWp, has_mask)),
    )(*args)

    out = out.reshape(B, Q, num_heads, HWp)
    if HWp != HW:
        out = out[..., :HW]
    return out.reshape(B, Q, num_heads, H, W)


# ---------------------------- pure-JAX reference --------------------------- #

def _mha_map_ref(params, q, k, mask, num_heads):
    hp = jax.lax.Precision.HIGHEST
    Wq, bq, Wk, bk = params["wq"], params["bq"], params["wk"], params["bk"]
    B, Q, D = q.shape
    Hd = Wq.shape[0]
    hd = Hd // num_heads
    H, W = k.shape[-2], k.shape[-1]
    fact = float(Hd / num_heads) ** (-0.5)

    qp = jnp.einsum("bqd,ed->bqe", q, Wq, precision=hp) + bq          # (B,Q,Hd)
    kp = jnp.einsum("ed,bdhw->behw", Wk, k, precision=hp) \
        + bk[None, :, None, None]                                     # (B,Hd,H,W)
    qh = qp.reshape(B, Q, num_heads, hd)
    kh = kp.reshape(B, num_heads, hd, H, W)
    w = jnp.einsum("bqnc,bnchw->bqnhw", qh * fact, kh, precision=hp)
    if mask is not None:
        w = jnp.where(mask[:, None, None, :, :], -jnp.inf, w)
    shape = w.shape
    wf = jax.nn.softmax(w.reshape(B, Q, -1), axis=-1)                 # flatten(2)
    return wf.reshape(shape)


# ----------------------------------- main ----------------------------------- #

if __name__ == "__main__":
    B, Q, D = 2, 8, 32          # batch, num queries, query_dim
    Hd, Nh = 32, 4              # hidden_dim, num_heads -> head_dim = 8
    H, W = 16, 16               # spatial

    key = jax.random.PRNGKey(0)
    ks = jax.random.split(key, 7)
    params = {
        "wq": 0.2 * jax.random.normal(ks[0], (Hd, D), jnp.float32),
        "bq": 0.1 * jax.random.normal(ks[1], (Hd,), jnp.float32),
        "wk": 0.2 * jax.random.normal(ks[2], (Hd, D), jnp.float32),
        "bk": 0.1 * jax.random.normal(ks[3], (Hd,), jnp.float32),
    }
    q = jax.random.normal(ks[4], (B, Q, D), jnp.float32)
    k = jax.random.normal(ks[5], (B, D, H, W), jnp.float32)
    mask = jax.random.uniform(ks[6], (B, H, W)) < 0.2     # ~20% masked

    prepped = prepare_mh_attention_params(params, num_heads=Nh)

    # no-mask path
    out = jax.block_until_ready(mh_attention_map(prepped, q, k, num_heads=Nh))
    ref = jax.block_until_ready(_mha_map_ref(params, q, k, None, Nh))
    assert out.shape == (B, Q, Nh, H, W), out.shape
    np.testing.assert_allclose(np.asarray(out), np.asarray(ref),
                               rtol=5e-5, atol=1e-6)

    # masked path
    out_m = jax.block_until_ready(mh_attention_map(prepped, q, k, mask, num_heads=Nh))
    ref_m = jax.block_until_ready(_mha_map_ref(params, q, k, mask, Nh))
    assert out_m.shape == (B, Q, Nh, H, W), out_m.shape
    np.testing.assert_allclose(np.asarray(out_m), np.asarray(ref_m),
                               rtol=5e-5, atol=1e-6)

    print("KERNEL_OK")
</pallas_src>

<mosaic_0001>
module attributes {stable_mosaic.version = 11 : i64} {
  func.func @_mha_map_kernel(%arg0: i32, %arg1: memref<1x8x32xf32, #tpu.memory_space<vmem>>, %arg2: memref<1x32x256xf32, #tpu.memory_space<vmem>>, %arg3: memref<32x32xf32, #tpu.memory_space<vmem>>, %arg4: memref<1x32xf32, #tpu.memory_space<vmem>>, %arg5: memref<32x32xf32, #tpu.memory_space<vmem>>, %arg6: memref<1x32xf32, #tpu.memory_space<vmem>>, %arg7: memref<1x8x1024xf32, #tpu.memory_space<vmem>>, %arg8: memref<1x8x1024xf32, #tpu.memory_space<vmem>>) attributes {dimension_semantics = [#tpu.dimension_semantics<parallel>], iteration_bounds = array<i64: 2>, scalar_prefetch = 0 : i64, scratch_operands = 1 : i64, tpu.core_type = #tpu.core_type<tc>, window_params = [{transform_indices = @transform_0, window_bounds = array<i64: 1, 8, 32>}, {transform_indices = @transform_1, window_bounds = array<i64: 1, 32, 256>}, {pipeline_mode = #tpu.pipeline_mode<synchronous>, transform_indices = @transform_2, window_bounds = array<i64: 32, 32>}, {pipeline_mode = #tpu.pipeline_mode<synchronous>, transform_indices = @transform_3, window_bounds = array<i64: 1, 32>}, {pipeline_mode = #tpu.pipeline_mode<synchronous>, transform_indices = @transform_4, window_bounds = array<i64: 32, 32>}, {pipeline_mode = #tpu.pipeline_mode<synchronous>, transform_indices = @transform_5, window_bounds = array<i64: 1, 32>}, {transform_indices = @transform_6, window_bounds = array<i64: 1, 8, 1024>}]} {
    %c0 = arith.constant 0 : index
    %c0_0 = arith.constant 0 : index
    %c0_1 = arith.constant 0 : index
    %0 = vector.load %arg1[%c0, %c0_0, %c0_1] : memref<1x8x32xf32, #tpu.memory_space<vmem>>, vector<1x8x32xf32>
    %1 = vector.shape_cast %0 : vector<1x8x32xf32> to vector<8x32xf32>
    %c0_2 = arith.constant 0 : index
    %c0_3 = arith.constant 0 : index
    %2 = vector.load %arg3[%c0_2, %c0_3] : memref<32x32xf32, #tpu.memory_space<vmem>>, vector<32x32xf32>
    %cst = arith.constant dense<0.000000e+00> : vector<8x32xf32>
    %3 = tpu.matmul %1, %2, %cst {dimension_numbers = #tpu.dot_dimension_numbers<[1], [0], [0], [1], [0, 0, 1, 1], [], []>} : vector<8x32xf32>, vector<32x32xf32>, vector<8x32xf32> -> vector<8x32xf32>
    %c0_4 = arith.constant 0 : index
    %c0_5 = arith.constant 0 : index
    %4 = vector.load %arg4[%c0_4, %c0_5] : memref<1x32xf32, #tpu.memory_space<vmem>>, vector<1x32xf32>
    %5 = vector.broadcast %4 : vector<1x32xf32> to vector<8x32xf32>
    %6 = arith.addf %3, %5 : vector<8x32xf32>
    %c0_6 = arith.constant 0 : index
    %c0_7 = arith.constant 0 : index
    %7 = vector.load %arg6[%c0_6, %c0_7] : memref<1x32xf32, #tpu.memory_space<vmem>>, vector<1x32xf32>
    %8 = vector.broadcast %7 : vector<1x32xf32> to vector<8x32xf32>
    %9 = arith.mulf %6, %8 : vector<8x32xf32>
    %10 = vector.extract_strided_slice %6 {offsets = [0, 0], sizes = [8, 8], strides = [1, 1]} : vector<8x32xf32> to vector<8x8xf32>
    %c0_8 = arith.constant 0 : index
    %c0_9 = arith.constant 0 : index
    %11 = vector.load %arg5[%c0_8, %c0_9] : memref<32x32xf32, #tpu.memory_space<vmem>>, vector<8x32xf32>
    %cst_10 = arith.constant dense<0.000000e+00> : vector<8x32xf32>
    %12 = tpu.matmul %10, %11, %cst_10 {dimension_numbers = #tpu.dot_dimension_numbers<[1], [0], [0], [1], [0, 0, 1, 1], [], []>} : vector<8x8xf32>, vector<8x32xf32>, vector<8x32xf32> -> vector<8x32xf32>
    %13 = vector.extract_strided_slice %9 {offsets = [0, 0], sizes = [8, 8], strides = [1, 1]} : vector<8x32xf32> to vector<8x8xf32>
    %cst_11 = arith.constant dense<0.000000e+00> : vector<8xf32>
    %14 = vector.multi_reduction <add>, %13, %cst_11 [1] : vector<8x8xf32> to vector<8xf32>
    %15 = vector.shape_cast %14 : vector<8xf32> to vector<8x1xf32>
    %16 = vector.extract_strided_slice %6 {offsets = [0, 8], sizes = [8, 8], strides = [1, 1]} : vector<8x32xf32> to vector<8x8xf32>
    %c8 = arith.constant 8 : index
    %c0_12 = arith.constant 0 : index
    %17 = vector.load %arg5[%c8, %c0_12] : memref<32x32xf32, #tpu.memory_space<vmem>>, vector<8x32xf32>
    %cst_13 = arith.constant dense<0.000000e+00> : vector<8x32xf32>
    %18 = tpu.matmul %16, %17, %cst_13 {dimension_numbers = #tpu.dot_dimension_numbers<[1], [0], [0], [1], [0, 0, 1, 1], [], []>} : vector<8x8xf32>, vector<8x32xf32>, vector<8x32xf32> -> vector<8x32xf32>
    %19 = vector.extract_strided_slice %9 {offsets = [0, 8], sizes = [8, 8], strides = [1, 1]} : vector<8x32xf32> to vector<8x8xf32>
    %cst_14 = arith.constant dense<0.000000e+00> : vector<8xf32>
    %20 = vector.multi_reduction <add>, %19, %cst_14 [1] : vector<8x8xf32> to vector<8xf32>
    %21 = vector.shape_cast %20 : vector<8xf32> to vector<8x1xf32>
    %22 = vector.extract_strided_slice %6 {offsets = [0, 16], sizes = [8, 8], strides = [1, 1]} : vector<8x32xf32> to vector<8x8xf32>
    %c16 = arith.constant 16 : index
    %c0_15 = arith.constant 0 : index
    %23 = vector.load %arg5[%c16, %c0_15] : memref<32x32xf32, #tpu.memory_space<vmem>>, vector<8x32xf32>
    %cst_16 = arith.constant dense<0.000000e+00> : vector<8x32xf32>
    %24 = tpu.matmul %22, %23, %cst_16 {dimension_numbers = #tpu.dot_dimension_numbers<[1], [0], [0], [1], [0, 0, 1, 1], [], []>} : vector<8x8xf32>, vector<8x32xf32>, vector<8x32xf32> -> vector<8x32xf32>
    %25 = vector.extract_strided_slice %9 {offsets = [0, 16], sizes = [8, 8], strides = [1, 1]} : vector<8x32xf32> to vector<8x8xf32>
    %cst_17 = arith.constant dense<0.000000e+00> : vector<8xf32>
    %26 = vector.multi_reduction <add>, %25, %cst_17 [1] : vector<8x8xf32> to vector<8xf32>
    %27 = vector.shape_cast %26 : vector<8xf32> to vector<8x1xf32>
    %28 = vector.extract_strided_slice %6 {offsets = [0, 24], sizes = [8, 8], strides = [1, 1]} : vector<8x32xf32> to vector<8x8xf32>
    %c24 = arith.constant 24 : index
    %c0_18 = arith.constant 0 : index
    %29 = vector.load %arg5[%c24, %c0_18] : memref<32x32xf32, #tpu.memory_space<vmem>>, vector<8x32xf32>
    %cst_19 = arith.constant dense<0.000000e+00> : vector<8x32xf32>
    %30 = tpu.matmul %28, %29, %cst_19 {dimension_numbers = #tpu.dot_dimension_numbers<[1], [0], [0], [1], [0, 0, 1, 1], [], []>} : vector<8x8xf32>, vector<8x32xf32>, vector<8x32xf32> -> vector<8x32xf32>
    %31 = vector.extract_strided_slice %9 {offsets = [0, 24], sizes = [8, 8], strides = [1, 1]} : vector<8x32xf32> to vector<8x8xf32>
    %cst_20 = arith.constant dense<0.000000e+00> : vector<8xf32>
    %32 = vector.multi_reduction <add>, %31, %cst_20 [1] : vector<8x8xf32> to vector<8xf32>
    %33 = vector.shape_cast %32 : vector<8xf32> to vector<8x1xf32>
    %c0_21 = arith.constant 0 : index
    %c0_22 = arith.constant 0 : index
    %c0_23 = arith.constant 0 : index
    %34 = vector.load %arg2[%c0_21, %c0_22, %c0_23] : memref<1x32x256xf32, #tpu.memory_space<vmem>>, vector<1x32x256xf32>
    %35 = vector.shape_cast %34 : vector<1x32x256xf32> to vector<32x256xf32>
    %cst_24 = arith.constant dense<0.000000e+00> : vector<8x256xf32>
    %36 = tpu.matmul %12, %35, %cst_24 {dimension_numbers = #tpu.dot_dimension_numbers<[1], [0], [0], [1], [0, 0, 1, 1], [], []>} : vector<8x32xf32>, vector<32x256xf32>, vector<8x256xf32> -> vector<8x256xf32>
    %37 = vector.broadcast %15 : vector<8x1xf32> to vector<8x256xf32>
    %38 = arith.addf %36, %37 : vector<8x256xf32>
    %c0_25 = arith.constant 0 : index
    %c0_26 = arith.constant 0 : index
    %c0_27 = arith.constant 0 : index
    %39 = vector.load %arg8[%c0_25, %c0_26, %c0_27] : memref<1x8x1024xf32, #tpu.memory_space<vmem>>, vector<1x8x256xf32>
    %40 = vector.shape_cast %39 : vector<1x8x256xf32> to vector<8x256xf32>
    %41 = vector.shape_cast %38 : vector<8x256xf32> to vector<1x8x256xf32>
    tpu.vector_store %arg8[%c0_25, %c0_26, %c0_27], %41 {strides = array<i32>} : memref<1x8x1024xf32, #tpu.memory_space<vmem>>, vector<1x8x256xf32>,
    %cst_28 = arith.constant dense<0.000000e+00> : vector<8x256xf32>
    %42 = tpu.matmul %18, %35, %cst_28 {dimension_numbers = #tpu.dot_dimension_numbers<[1], [0], [0], [1], [0, 0, 1, 1], [], []>} : vector<8x32xf32>, vector<32x256xf32>, vector<8x256xf32> -> vector<8x256xf32>
    %43 = vector.broadcast %21 : vector<8x1xf32> to vector<8x256xf32>
    %44 = arith.addf %42, %43 : vector<8x256xf32>
    %c0_29 = arith.constant 0 : index
    %c0_30 = arith.constant 0 : index
    %c256 = arith.constant 256 : index
    %45 = vector.load %arg8[%c0_29, %c0_30, %c256] : memref<1x8x1024xf32, #tpu.memory_space<vmem>>, vector<1x8x256xf32>
    %46 = vector.shape_cast %45 : vector<1x8x256xf32> to vector<8x256xf32>
    %47 = vector.shape_cast %44 : vector<8x256xf32> to vector<1x8x256xf32>
    tpu.vector_store %arg8[%c0_29, %c0_30, %c256], %47 {strides = array<i32>} : memref<1x8x1024xf32, #tpu.memory_space<vmem>>, vector<1x8x256xf32>,
    %cst_31 = arith.constant dense<0.000000e+00> : vector<8x256xf32>
    %48 = tpu.matmul %24, %35, %cst_31 {dimension_numbers = #tpu.dot_dimension_numbers<[1], [0], [0], [1], [0, 0, 1, 1], [], []>} : vector<8x32xf32>, vector<32x256xf32>, vector<8x256xf32> -> vector<8x256xf32>
    %49 = vector.broadcast %27 : vector<8x1xf32> to vector<8x256xf32>
    %50 = arith.addf %48, %49 : vector<8x256xf32>
    %c0_32 = arith.constant 0 : index
    %c0_33 = arith.constant 0 : index
    %c512 = arith.constant 512 : index
    %51 = vector.load %arg8[%c0_32, %c0_33, %c512] : memref<1x8x1024xf32, #tpu.memory_space<vmem>>, vector<1x8x256xf32>
    %52 = vector.shape_cast %51 : vector<1x8x256xf32> to vector<8x256xf32>
    %53 = vector.shape_cast %50 : vector<8x256xf32> to vector<1x8x256xf32>
    tpu.vector_store %arg8[%c0_32, %c0_33, %c512], %53 {strides = array<i32>} : memref<1x8x1024xf32, #tpu.memory_space<vmem>>, vector<1x8x256xf32>,
    %cst_34 = arith.constant dense<0.000000e+00> : vector<8x256xf32>
    %54 = tpu.matmul %30, %35, %cst_34 {dimension_numbers = #tpu.dot_dimension_numbers<[1], [0], [0], [1], [0, 0, 1, 1], [], []>} : vector<8x32xf32>, vector<32x256xf32>, vector<8x256xf32> -> vector<8x256xf32>
    %55 = vector.broadcast %33 : vector<8x1xf32> to vector<8x256xf32>
    %56 = arith.addf %54, %55 : vector<8x256xf32>
    %c0_35 = arith.constant 0 : index
    %c0_36 = arith.constant 0 : index
    %c768 = arith.constant 768 : index
    %57 = vector.load %arg8[%c0_35, %c0_36, %c768] : memref<1x8x1024xf32, #tpu.memory_space<vmem>>, vector<1x8x256xf32>
    %58 = vector.shape_cast %57 : vector<1x8x256xf32> to vector<8x256xf32>
    %59 = vector.shape_cast %56 : vector<8x256xf32> to vector<1x8x256xf32>
    tpu.vector_store %arg8[%c0_35, %c0_36, %c768], %59 {strides = array<i32>} : memref<1x8x1024xf32, #tpu.memory_space<vmem>>, vector<1x8x256xf32>,
    %c0_37 = arith.constant 0 : index
    %c0_38 = arith.constant 0 : index
    %c0_39 = arith.constant 0 : index
    %60 = vector.load %arg8[%c0_37, %c0_38, %c0_39] : memref<1x8x1024xf32, #tpu.memory_space<vmem>>, vector<1x8x1024xf32>
    %cst_40 = arith.constant dense<0xFF800000> : vector<1x8xf32>
    %61 = vector.multi_reduction <maximumf>, %60, %cst_40 [2] : vector<1x8x1024xf32> to vector<1x8xf32>
    %62 = vector.shape_cast %61 : vector<1x8xf32> to vector<1x8x1xf32>
    %63 = vector.broadcast %62 : vector<1x8x1xf32> to vector<1x8x1024xf32>
    %64 = arith.subf %60, %63 : vector<1x8x1024xf32>
    %65 = math.exp %64 : vector<1x8x1024xf32>
    %cst_41 = arith.constant dense<0.000000e+00> : vector<1x8xf32>
    %66 = vector.multi_reduction <add>, %65, %cst_41 [2] : vector<1x8x1024xf32> to vector<1x8xf32>
    %67 = vector.shape_cast %66 : vector<1x8xf32> to vector<1x8x1xf32>
    %68 = tpu.reciprocal %67 {approx = true} : vector<1x8x1xf32> -> vector<1x8x1xf32>
    %69 = arith.mulf %67, %68 : vector<1x8x1xf32>
    %cst_42 = arith.constant 2.000000e+00 : f32
    %70 = vector.broadcast %cst_42 : f32 to vector<1x8x1xf32>
    %71 = arith.subf %70, %69 : vector<1x8x1xf32>
    %72 = arith.mulf %68, %71 : vector<1x8x1xf32>
    %73 = vector.broadcast %72 : vector<1x8x1xf32> to vector<1x8x1024xf32>
    %74 = arith.mulf %65, %73 : vector<1x8x1024xf32>
    %c0_43 = arith.constant 0 : index
    %c0_44 = arith.constant 0 : index
    %c0_45 = arith.constant 0 : index
    %75 = vector.load %arg7[%c0_43, %c0_44, %c0_45] : memref<1x8x1024xf32, #tpu.memory_space<vmem>>, vector<1x8x1024xf32>
    tpu.vector_store %arg7[%c0_43, %c0_44, %c0_45], %74 {strides = array<i32>} : memref<1x8x1024xf32, #tpu.memory_space<vmem>>, vector<1x8x1024xf32>,
    return
  }
  func.func @transform_0(%arg0: i32) -> (i32, i32, i32) {
    %c0_i32 = arith.constant 0 : i32
    %c0_i32_0 = arith.constant 0 : i32
    %c0_i32_1 = arith.constant 0 : i32
    return %arg0, %c0_i32, %c0_i32_0 : i32, i32, i32
  }
  func.func @transform_1(%arg0: i32) -> (i32, i32, i32) {
    %c0_i32 = arith.constant 0 : i32
    %c0_i32_0 = arith.constant 0 : i32
    %c0_i32_1 = arith.constant 0 : i32
    return %arg0, %c0_i32, %c0_i32_0 : i32, i32, i32
  }
  func.func @transform_2(%arg0: i32) -> (i32, i32) {
    %c0_i32 = arith.constant 0 : i32
    %c0_i32_0 = arith.constant 0 : i32
    %c0_i32_1 = arith.constant 0 : i32
    return %c0_i32, %c0_i32_0 : i32, i32
  }
  func.func @transform_3(%arg0: i32) -> (i32, i32) {
    %c0_i32 = arith.constant 0 : i32
    %c0_i32_0 = arith.constant 0 : i32
    %c0_i32_1 = arith.constant 0 : i32
    return %c0_i32, %c0_i32_0 : i32, i32
  }
  func.func @transform_4(%arg0: i32) -> (i32, i32) {
    %c0_i32 = arith.constant 0 : i32
    %c0_i32_0 = arith.constant 0 : i32
    %c0_i32_1 = arith.constant 0 : i32
    return %c0_i32, %c0_i32_0 : i32, i32
  }
  func.func @transform_5(%arg0: i32) -> (i32, i32) {
    %c0_i32 = arith.constant 0 : i32
    %c0_i32_0 = arith.constant 0 : i32
    %c0_i32_1 = arith.constant 0 : i32
    return %c0_i32, %c0_i32_0 : i32, i32
  }
  func.func @transform_6(%arg0: i32) -> (i32, i32, i32) {
    %c0_i32 = arith.constant 0 : i32
    %c0_i32_0 = arith.constant 0 : i32
    %c0_i32_1 = arith.constant 0 : i32
    return %arg0, %c0_i32, %c0_i32_0 : i32, i32, i32
  }
}

</mosaic_0001>

<bundles_post_ra>
// kernel: tpu_custom_call.1
= control target key start
LH: loop header
LB: loop body
LE: loop exit
PB: predicated region body
PF: predicated region fallthrough
CT: control target
= control target key end

     0   :  { %s1970_s0 = inlined_call_operand.hbm [shape: f32[2,8,32], index: 0, kind: input, shape index: {}]   ;;  %s1971_s1 = inlined_call_operand.hbm [shape: f32[2,32,256], index: 1, kind: input, shape index: {}]   ;;  %s1972_s2 = inlined_call_operand.hbm [shape: f32[32,32], index: 2, kind: input, shape index: {}]   ;;  %s1973_s3 = inlined_call_operand.vmem [shape: f32[1,32], index: 3, kind: input, shape index: {}]   ;;  %s1974_s4 = inlined_call_operand.hbm [shape: f32[32,32], index: 4, kind: input, shape index: {}]   ;;  %s1975_s5 = inlined_call_operand.vmem [shape: f32[1,32], index: 5, kind: input, shape index: {}]   ;;  %s1976_s6 = inlined_call_operand.hbm [shape: f32[2,8,1024], index: 6, kind: output, shape index: {}]  }
   0x1   :  { %1980 = sst [smem:[#allocation17_spill]] %s1970_s0 }
   0x2   :  { %1981 = sst [smem:[#allocation18_spill]] %s1972_s2 }
   0x3   :  { %11 = vsyncpa [#allocation4], 0 }
   0x4   :  { %13 = vsyncpa [#allocation4 + $0x1], 0 }
   0x5   :  { %14 = vsyncpa [#allocation7], 0 }
   0x6   :  { %16 = vsyncpa [#allocation7 + $0x1], 0 }
   0x7   :  { %17 = vsyncpa [#allocation10], 0 }
   0x8   :  { %18 = vsyncpa [#allocation5], 0 }
   0x9   :  { %20 = vsyncpa [#allocation5 + $0x1], 0  ;;  %s1673_s21 = smov 0   ;;  %s1675_s22 = smov 0  }
   0xa   :  { %s1677_s23 = smov 0   ;;  %s1679_s24 = smov 0  }
   0xb LB: > { %s1694_s25 = sadd.s32 4294967295, %s1622_s24   ;;  %s1261_s26 = sadd.s32 4294967294, %s1622_s24   ;;  %s1622_s24 = sphi %s1679_s24, %s2004_s24   ;;  %s1618_s23 = sphi %s1677_s23, %s2003_s23   ;;  %s1614_s22 = sphi %s1675_s22, %s2002_s22   ;;  %s1610_s21 = sphi %s1673_s21, %s2001_s21  }
   0xc   : > { %p46_p0 = scmp.ne.s32.totalorder %s1614_s22, %s1610_s21  ;;  %p1977_p1 = scmp.eq.s32.totalorder %s1694_s25, 0 }
   0xd   : > { %p186_p3 = scmp.eq.s32.totalorder %s1261_s26, 1  ;;  %p1262_p5 = scmp.ge.s32.totalorder %s1622_s24, 1 }
   0xe   : > { %p1703_p4 = por %p1977_p1, %p46_p0  ;;  %p193_p7 = scmp.lt.s32.totalorder %s1622_s24, 3 }
   0xf   : > { %p1708_p6 = por %p186_p3, %p46_p0  ;;  %s1624_s30 = smov [#allocation8]  }
  0x10   : > { %s1982_s27 = scalar_select %p1703_p4, 1, 0 }
  0x11   : > { %s1983_s28 = scalar_select %p1708_p6, 1, 0 }
  0x12   : > { %p1713_p8 = pnand %p1262_p5, %p193_p7  ;;  %s205_s7 = sshll.u32 %s1624_s30, 4  ;;  %s206_s7 = int_to_ptr.vmem [resolvable:$true] %s205_s7 }
  0x13   : > { %s1625_s9 = smov [#allocation9]   ;;  %s1449_s11 = scalar_lea.vmem %s206_s7, 512 }
  0x14   : > { %p1353_p9 = pneg %p1713_p8  ;;  %s221_s10 = sshll.u32 %s1625_s9, 4  ;;  %s222_s10 = int_to_ptr.vmem [resolvable:$true] %s221_s10 }
  0x15   : > { %p1450_p13 = scmp.ne.s32.totalorder %s206_s7, %s1449_s11  ;;  %p1457_p5 = scmp.lt.s32.totalorder %s206_s7, %s206_s7 }
  0x16   : > { %p1722_p11 = pnand %p1353_p9, %p1977_p1  ;;  %p1458_p7 = scmp.lt.s32.totalorder %s1449_s11, %s1449_s11 }
  0x18   : > { %p1440_p12 = pneg %p1722_p11  ;;  %p1459_p10 = por %p1458_p7, %p1457_p5 }
  0x1a   : > { %p1452_p0 = pnand %p1450_p13, %p1440_p12 }
  0x1c   : > { %p1453_p3 = pneg %p1452_p0 }
  0x1e   : > { %p1460_p9 = pnand %p1459_p10, %p1453_p3 }
  0x20   : > { %1463 = shalt.err (!%p1460_p9)
}
  0x21   : > { %s1626_s12 = smov 128   ;;  %s1627_s13 = smov 8  }
  0x22   : > { %s1986_s2 = sld [smem:[#allocation18_spill]]  ;;  %s1475_s16 = scalar_lea.vmem %s222_s10, 512 }
  0x23   : > { %p1476_p1 = scmp.ne.s32.totalorder %s222_s10, %s1475_s16  ;;  %p1483_p2 = scmp.lt.s32.totalorder %s222_s10, %s222_s10 }
  0x24   : > { %p1484_p6 = scmp.lt.s32.totalorder %s1475_s16, %s1475_s16 }
  0x25   : > { %p1478_p13 = pnand %p1476_p1, %p1440_p12 }
  0x26   : > { %p1485_p5 = por %p1484_p6, %p1483_p2 }
  0x27   : > { %p1479_p0 = pneg %p1478_p13 }
  0x28   : > { %1356 = dma.hbm_to_vmem [thread:$0]  (!%p1722_p11), %s1986_s2, 512, %s206_s7, [#allocation7], %s1626_s12, %s1626_s12, %s1627_s13  }
  0x29   : > { %p1486_p10 = pnand %p1485_p5, %p1479_p0 }
  0x2b   : > { %1489 = shalt.err (!%p1486_p10)
}
  0x2c   : > { %1359 = dma.hbm_to_vmem [thread:$0]  (!%p1722_p11), %s1974_s4, 512, %s222_s10, [#allocation10], %s1626_s12, %s1626_s12, %s1627_s13  }
  0x2d   : > { %s1745_s19 = sadd.s32 1, %s1622_s24   ;;  %s33_s20 = sadd.s32 1, %s1618_s23 }
  0x2e   : > { %s30_s26 = ssub.s32 %s1622_s24, %s1745_s19  ;;  %p40_p1 = scmp.ne.s32.totalorder %s1618_s23, %s1614_s22 }
  0x2f   : > { %p31_p2 = scmp.eq.s32.totalorder %s30_s26, 0  ;;  %p41_p6 = scmp.eq.s32.totalorder %s1622_s24, 0 }
  0x30   : > { %p1987_p12 = scmp.eq.s32.totalorder %s1694_s25, 1  ;;  %p1373_p7 = scmp.lt.s32.totalorder %s1622_s24, 2 }
  0x31   : > { %s1761_s7 = scalar_select %p31_p2, %s1618_s23, %s33_s20  }
  0x32   : > { %p1755_p3 = por %p1987_p12, %p40_p1  ;;  %p42_p9 = por %p41_p6, %p40_p1 }
  0x33   : > { %s1764_s8 = sand.u32 1, %s1618_s23   ;;  %s1267_s10 = sshll.u32 %s1622_s24, 7 }
  0x34   : > { %s1988_s30 = scalar_select %p1755_p3, 1, 0 }
  0x35   : > { %s1266_s9 = sshll.u32 %s1764_s8, 3  ;;  %s1989_s0 = sld [smem:[#allocation17_spill]] }
  0x36   : > { %s242_s14 = scalar_lea.vmem [#allocation3], %s1266_s9  ;;  %p1775_p11 = pnand %p1373_p7, %p42_p9 }
  0x37   : > { %s249_s15 = sshll.u32 %s242_s14, 4  ;;  %s239_s20 = scalar_lea.sflag [#allocation4], %s1764_s8  ;;  %s1773_s15 = int_to_ptr.vmem [resolvable:$true] %s249_s15 }
  0x38   : > { %p1492_p0 = pneg %p1775_p11 }
  0x3b   : > { %s1771_s13 = scalar_lea.hbm %s1989_s0, %s1267_s10  ;;  %s1495_s11 = scalar_lea.hbm %s1989_s0, 256 }
  0x3c   : > { %s1490_s26 = scalar_lea.hbm %s1771_s13, 128  ;;  %p1496_p1 = scmp.lt.s32.totalorder %s1771_s13, %s1989_s0 }
  0x3d   : > { %p1491_p13 = scmp.ne.s32.totalorder %s1771_s13, %s1490_s26  ;;  %p1497_p2 = scmp.lt.s32.totalorder %s1495_s11, %s1490_s26 }
  0x3f   : > { %p1493_p5 = pnand %p1492_p0, %p1491_p13  ;;  %p1498_p6 = por %p1497_p2, %p1496_p1 }
  0x41   : > { %p1494_p10 = pneg %p1493_p5 }
  0x43   : > { %p1499_p12 = pnand %p1498_p6, %p1494_p10 }
  0x45   : > { %1502 = shalt.err (!%p1499_p12)
}
  0x46   : > { %s1503_s18 = scalar_lea.vmem %s1773_s15, 128  ;;  %s1628_s9 = smov [#allocation3]  }
  0x47   : > { %p1504_p7 = scmp.ne.s32.totalorder %s1773_s15, %s1503_s18  ;;  %s1508_s10 = sshll.u32 %s1628_s9, 4  ;;  %s1509_s10 = int_to_ptr.vmem [resolvable:$false] %s1508_s10 }
  0x48   : > { %s1510_s17 = scalar_lea.vmem %s1509_s10, 256  ;;  %p1511_p5 = scmp.lt.s32.totalorder %s1773_s15, %s1509_s10 }
  0x49   : > { %p1506_p9 = pnand %p1504_p7, %p1492_p0  ;;  %p1512_p3 = scmp.lt.s32.totalorder %s1510_s17, %s1503_s18 }
  0x4b   : > { %p1507_p13 = pneg %p1506_p9  ;;  %p1513_p4 = por %p1512_p3, %p1511_p5 }
  0x4d   : > { %p1514_p1 = pnand %p1513_p4, %p1507_p13 }
  0x4f   : > { %1517 = shalt.err (!%p1514_p1)
}
  0x50   : > { %1363 = dma.hbm_to_vmem [thread:$0]  (!%p1775_p11), %s1771_s13, 128, %s1773_s15, %s239_s20  }
  0x51   : > { %s1991_s26 = sshll.u32 %s1764_s8, 6  ;;  %s1293_s14 = sshll.u32 %s1622_s24, 10 }
  0x52   : > { %s260_s11 = scalar_lea.vmem [#allocation6], %s1991_s26  ;;  %s1814_s18 = scalar_lea.hbm %s1971_s1, %s1293_s14 }
  0x53   : > { %s267_s12 = sshll.u32 %s260_s11, 4  ;;  %s1992_s10 = sand.u32 1, %s1622_s24   ;;  %s1808_s12 = int_to_ptr.vmem [resolvable:$true] %s267_s12 }
  0x54   : > { %s1818_s0 = scalar_lea.sflag [#allocation7], %s1992_s10  ;;  %s1518_s2 = scalar_lea.hbm %s1814_s18, 1024 }
  0x55   : > { %p1519_p4 = scmp.ne.s32.totalorder %s1814_s18, %s1518_s2  ;;  %s1523_s15 = scalar_lea.hbm %s1971_s1, 2048 }
  0x56   : > { %p1524_p2 = scmp.lt.s32.totalorder %s1814_s18, %s1971_s1  ;;  %p1525_p6 = scmp.lt.s32.totalorder %s1523_s15, %s1518_s2 }
  0x57   : > { %p1521_p3 = pnand %p1519_p4, %p1492_p0 }
  0x58   : > { %p1526_p12 = por %p1525_p6, %p1524_p2 }
  0x59   : > { %p1522_p10 = pneg %p1521_p3 }
  0x5b   : > { %p1527_p7 = pnand %p1526_p12, %p1522_p10 }
  0x5d   : > { %1530 = shalt.err (!%p1527_p7)
}
  0x5e   : > { %s1531_s11 = scalar_lea.vmem %s1808_s12, 1024  ;;  %s1629_s14 = smov [#allocation6]  }
  0x5f   : > { %p1532_p9 = scmp.ne.s32.totalorder %s1808_s12, %s1531_s11  ;;  %s1536_s9 = sshll.u32 %s1629_s14, 4  ;;  %s1537_s9 = int_to_ptr.vmem [resolvable:$false] %s1536_s9 }
  0x60   : > { %s1538_s17 = scalar_lea.vmem %s1537_s9, 2048  ;;  %p1539_p1 = scmp.lt.s32.totalorder %s1808_s12, %s1537_s9 }
  0x61   : > { %p1534_p13 = pnand %p1532_p9, %p1492_p0  ;;  %p1540_p4 = scmp.lt.s32.totalorder %s1538_s17, %s1531_s11 }
  0x63   : > { %p1535_p5 = pneg %p1534_p13  ;;  %p1541_p3 = por %p1540_p4, %p1539_p1 }
  0x65   : > { %p1542_p2 = pnand %p1541_p3, %p1535_p5 }
  0x67   : > { %1545 = shalt.err (!%p1542_p2)
}
  0x68   : > { %s1630_s2 = smov 256   ;;  %s1631_s10 = smov 16  }
  0x69   : > { %1366 = dma.hbm_to_vmem [thread:$0]  (!%p1775_p11), %s1814_s18, 1024, %s1808_s12, %s1818_s0, %s1630_s2, %s1630_s2, %s1631_s10  }
  0x6a   : > { %279 = sbr.rel (%p1713_p8) target bundleno = 1192 (0x4a8), region = 44  ;;  %s1846_s8 = sand.u32 (!%p1713_p8), 1, %s1614_s22  }
  0x6b   : > { %s1272_s13 = sshll.u32 (!%p1713_p8), %s1846_s8, 3  ;;  %s282_s15 = scalar_lea.sflag (!%p1713_p8), [#allocation4], %s1846_s8 }
  0x6c   : > { %s285_s20 = scalar_lea.vmem (!%p1713_p8), [#allocation3], %s1272_s13  ;;  %p1993_p0 = scmp.ne.s32.totalorder (!%p1713_p8), %s1982_s27, 0 }
  0x6f   : > { %1589 = dma.done.wait (%p1993_p0), %s282_s15, 128  }
  0x70   : > { %1591 = vsyncadd (%p1993_p0), %s282_s15, 4294967168  ;;  %s290_s0 = sand.u32 1, %s1694_s25   ;;  %s1273_s29 = sshll.u32 %s1846_s8, 6 }
  0x71   : > { %s291_s16 = scalar_lea.sflag [#allocation7], %s290_s0  ;;  %s1858_s12 = scalar_lea.vmem [#allocation6], %s1273_s29 }
  0x72   : > { %1593 = dma.done.wait (%p1993_p0), %s291_s16, 1024  }
  0x73   : > { %1595 = vsyncadd (%p1993_p0), %s291_s16, 4294966272  ;;  %p1994_p8 = scmp.eq.s32.totalorder %s1694_s25, 0 }
  0x75   : > { %1597 = dma.done.wait (%p1994_p8), [#allocation7], 512   ;;  %p1995_p11 = pmov %p1994_p8 }
  0x76   : > { %p1996_p10 = pmov %p1994_p8 }
  0x77   : > { %1599 = vsyncadd (%p1995_p11), [#allocation7], 4294966784 }
  0x78   : > { %1601 = dma.done.wait (%p1996_p10), [#allocation10], 512   ;;  %p1997_p6 = pmov %p1994_p8 }
  0x79   : > { %v1632_v0 = vmov 0.0   ;;  %vm1633_vm0 = vmmov 0   ;;  %v340_v1 = vld [vmem:[#allocation8 + $0x18] sm:$0xff]  ;;  %v339_v2 = vld [vmem:[#allocation8 + $0x10] sm:$0xff]  ;;  %v338_v3 = vld [vmem:[#allocation8 + $0x8] sm:$0xff]  ;;  %vm348_vm1 = vcmask 261120  }
  0x7a   : > { %1603 = vsyncadd (%p1997_p6), [#allocation10], 4294966784  ;;  %1308 = vmatprep.subr.mxu0 %v1632_v0  ;;  %1316 = vmatprep.mubr.msk.f32.mxu0 %vm1633_vm0, %v1632_v0  ;;  %v337_v4 = vld [vmem:[#allocation8] sm:$0xff]  ;;  %v336_v5 = vld [vmem:[%s285_s20] sm:$0xff]  ;;  %vm431_vm2 = vcmask 64512   ;;  %s1634_s14 = smov 104  }
  0x7b   : > { %1319 = vmatprep.subr.mxu1 %v1632_v0  ;;  %1321 = vmatprep.mubr.msk.f32.mxu1 %vm1633_vm0, %v1632_v0  ;;  %v430_v6 = vld [vmem:[#allocation9] sm:$0xff]  ;;  %v671_v7 = vld [vmem:[#allocation9 + $0x18] sm:$0xff]  ;;  %v1277_v8 = vld [vmem:[%s1973_s3] ss:$0 sm:$0xff]  ;;  %s1635_s9 = smov 120   ;;  %s1636_s17 = smov 112  }
  0x7c   : > { %1309 = vmatpush3.msra.mxu0 %v340_v1  ;;  %1320 = vmatpush3.msra.mxu1 %v430_v6  ;;  %v1279_v12 = vld [vmem:[%s1975_s5] ss:$0 sm:$0xff]  ;;  %v508_v13 = vld [vmem:[#allocation9 + $0x8] sm:$0xff]  ;;  %v759_v16 = vld [vmem:[%s1858_s12 + $0x38] sm:$0xff]  ;;  %s1294_s2 = sshll.u32 %s1694_s25, 10  ;;  %s335_s10 = scalar_lea.vmem [#allocation11], %s1273_s29 }
  0x7d   : > { %1310 = vmatprep.subr.mxu0 %v1632_v0  ;;  %1324 = vmatprep.subr.mxu1 %v1632_v0  ;;  %v590_v17 = vld [vmem:[#allocation9 + $0x10] sm:$0xff]  ;;  %v757_v21 = vld [vmem:[%s1858_s12 + $0x28] sm:$0xff]  ;;  %v756_v24 = vld [vmem:[%s1858_s12 + $0x20] sm:$0xff]  ;;  %s1149_s13 = sshll.u32 %s335_s10, 4  ;;  %s1927_s0 = scalar_lea.hbm %s1976_s6, %s1294_s2  ;;  %s1929_s13 = int_to_ptr.vmem [resolvable:$true] %s1149_s13 }
  0x7e   : > { %1311 = vmatpush3.msra.mxu0 %v339_v2  ;;  %v758_v20 = vld [vmem:[%s1858_s12 + $0x30] sm:$0xff]  ;;  %v755_v26 = vld [vmem:[%s1858_s12 + $0x18] sm:$0xff]  ;;  %v753_v29 = vld [vmem:[%s1858_s12 + $0x8] sm:$0xff]  ;;  %s1135_s25 = scalar_lea.sflag [#allocation5], %s1846_s8  ;;  %s1546_s29 = scalar_lea.vmem %s1929_s13, 1024 }
  0x7f   : > { %1312 = vmatprep.subr.mxu0 %v1632_v0  ;;  %v754_v27 = vld [vmem:[%s1858_s12 + $0x10] sm:$0xff]  ;;  %v752_v31 = vld [vmem:[%s1858_s12] sm:$0xff]  ;;  %p1547_p12 = scmp.ne.s32.totalorder %s1929_s13, %s1546_s29  ;;  %p1998_p7 = scmp.ne.s32.totalorder %s1988_s30, 0 }
  0x80   : > { %1313 = vmatpush3.msra.mxu0 %v338_v3  ;;  %s1637_s16 = smov [#allocation11]  }
  0x81   : > { %1314 = vmatprep.subr.mxu0 %v1632_v0  ;;  %p1548_p9 = pnand %p1547_p12, %p1998_p7  ;;  %s1550_s12 = sshll.u32 %s1637_s16, 4  ;;  %s1551_s12 = int_to_ptr.vmem [resolvable:$false] %s1550_s12 }
  0x82   : > { %1315 = vmatpush3.msra.mxu0 %v337_v4  ;;  %s1552_s27 = scalar_lea.vmem %s1551_s12, 2048  ;;  %p1553_p5 = scmp.lt.s32.totalorder %s1929_s13, %s1551_s12 }
  0x83   : > { %1317 = vmatmul.mubr.msk.f32.vlgmr.msra.gmra.mxu0 %vm348_vm1, %v336_v5  ;;  %1334 = vmatprep.subr.mxu0 %v1632_v0  ;;  %p1549_p13 = pneg %p1548_p9  ;;  %p1554_p1 = scmp.lt.s32.totalorder %s1552_s27, %s1546_s29 }
  0x84   : > { %1336 = vmatprep.mubr.msk.f32.mxu0 %vm1633_vm0, %v1632_v0  ;;  %1335 = vmatpush3.msra.mxu0 %v671_v7 }
  0x85   : > { %863 = vmatprep.subr.mxu0 %v759_v16  ;;  %p1555_p4 = por %p1554_p1, %p1553_p5 }
  0x87   : > { %p1556_p3 = pnand %p1555_p4, %p1549_p13 }
 0x143   : > { %v418_v9 = vpop.f32.mrf.mxu0 }
 0x144   : > { %v419_v10 = vadd.f32 %v1277_v8, %v418_v9 }
 0x145   : > { %v1318_v11 = vpop.f32.mrf.mxu0 }
 0x146   : > { %672 = vrot.lane.b32.xlu1 %v419_v10, %s1634_s14  ;;  %509 = vrot.lane.b32.xlu0 %v419_v10, %s1635_s9  ;;  %v429_v14 = vmul.f32 %v1279_v12, %v419_v10 }
 0x147   : > { %1322 = vmatmul.mubr.msk.f32.vlgmr.msra.gmra.mxu1 %vm431_vm2, %v419_v10 }
 0x148   : > { %1325 = vmatpush3.msra.mxu1 %v508_v13  ;;  %1326 = vmatprep.mubr.msk.f32.mxu1 %vm1633_vm0, %v1632_v0  ;;  %v505_v15 = vsel %vm431_vm2, %v429_v14, 0.0 }
 0x149   : > { %1329 = vmatprep.subr.mxu1 %v1632_v0 }
 0x14a   : > { %591 = vrot.lane.b32.xlu0 %v419_v10, %s1636_s17  ;;  %584 = vrot.lane.b32.xlu1 %v429_v14, %s1635_s9 }
 0x14e   : > { %665 = vrot.lane.b32.xlu0 %v429_v14, %s1636_s17  ;;  %746 = vrot.lane.b32.xlu1 %v429_v14, %s1634_s14 }
 0x16d   : > { %506 = vadd.xlane.f32.xlu0 %v505_v15 }
 0x1b8   : > { %v673_v18 = vpop.permute.xlu1 %672  ;;  %v510_v19 = vpop.permute.xlu0 %509 }
 0x1b9   : > { %1327 = vmatmul.mubr.msk.f32.vlgmr.msra.gmra.mxu1 %vm431_vm2, %v510_v19  ;;  %1337 = vmatmul.mubr.msk.f32.vlgmr.msra.gmra.mxu0 %vm431_vm2, %v673_v18 }
 0x1ba   : > { %1330 = vmatpush3.msra.mxu1 %v590_v17  ;;  %1331 = vmatprep.mubr.msk.f32.mxu1 %vm1633_vm0, %v1632_v0 }
 0x1bb   : > { %787 = vmatprep.subr.mxu1 %v759_v16  ;;  %864 = vmatpush1.msra.mxu0 %v758_v20 }
 0x1bc   : > { %v592_v22 = vpop.permute.xlu0 %591  ;;  %v585_v23 = vpop.permute.xlu1 %584  ;;  %865 = vmatprep.subr.mxu0 %v757_v21  ;;  %903 = vmatprep.mubr.f32.mxu0 %v1632_v0 }
 0x1bd   : > { %1332 = vmatmul.mubr.msk.f32.vlgmr.msra.gmra.mxu1 %vm431_vm2, %v592_v22  ;;  %v587_v25 = vsel %vm431_vm2, %v585_v23, 0.0  ;;  %866 = vmatpush1.msra.mxu0 %v756_v24 }
 0x1be   : > { %588 = vadd.xlane.f32.xlu1 %v587_v25  ;;  %788 = vmatpush1.msra.mxu1 %v758_v20 }
 0x1bf   : > { %789 = vmatprep.subr.mxu1 %v757_v21  ;;  %827 = vmatprep.mubr.f32.mxu1 %v1632_v0 }
 0x1c0   : > { %v666_v28 = vpop.permute.xlu0 %665  ;;  %790 = vmatpush1.msra.mxu1 %v756_v24  ;;  %867 = vmatprep.subr.mxu0 %v755_v26  ;;  %v747_v32 = vpop.permute.xlu1 %746 }
 0x1c1   : > { %v668_v30 = vsel %vm431_vm2, %v666_v28, 0.0  ;;  %791 = vmatprep.subr.mxu1 %v755_v26  ;;  %868 = vmatpush1.msra.mxu0 %v754_v27  ;;  %v749_v33 = vsel %vm431_vm2, %v747_v32, 0.0 }
 0x1c2   : > { %669 = vadd.xlane.f32.xlu0 %v668_v30  ;;  %792 = vmatpush1.msra.mxu1 %v754_v27 }
 0x1c3   : > { %793 = vmatprep.subr.mxu1 %v753_v29  ;;  %869 = vmatprep.subr.mxu0 %v753_v29 }
 0x1c4   : > { %794 = vmatpush1.msra.mxu1 %v752_v31  ;;  %870 = vmatpush1.msra.mxu0 %v752_v31 }
 0x1c5   : > { %939 = vmatprep.subr.mxu1 %v759_v16  ;;  %1015 = vmatprep.subr.mxu0 %v759_v16 }
 0x1c6   : > { %750 = vadd.xlane.f32.xlu0 %v749_v33 }
 0x1f6   : > { %v507_v42 = vpop.xlane.xlu0 %506 }
 0x207   : > { %v501_v34 = vpop.f32.mrf.mxu1 }
 0x208   : > { %1284 = vmatmul.mubr.msk.f32.vlgmr.msra.gmra.mxu1 %vm348_vm1, %v501_v34 }
 0x209   : > { %v1323_v35 = vpop.f32.mrf.mxu1  ;;  %940 = vmatpush1.msra.mxu1 %v758_v20  ;;  %979 = vmatprep.mubr.f32.mxu1 %v1632_v0 }
 0x20a   : > { %941 = vmatprep.subr.mxu1 %v757_v21 }
 0x20b   : > { %942 = vmatpush1.msra.mxu1 %v756_v24 }
 0x20c   : > { %943 = vmatprep.subr.mxu1 %v755_v26 }
 0x20d   : > { %944 = vmatpush1.msra.mxu1 %v754_v27 }
 0x20e   : > { %945 = vmatprep.subr.mxu1 %v753_v29 }
 0x20f   : > { %946 = vmatpush1.msra.mxu1 %v752_v31 }
 0x247   : > { %v589_v56 = vpop.xlane.xlu1 %588 }
 0x24b   : > { %v670_v44 = vpop.xlane.xlu0 %669 }
 0x24f   : > { %v751_v51 = vpop.xlane.xlu0 %750 }
 0x279   : > { %v579_v36 = vpop.f32.mrf.mxu1  ;;  %v742_v37 = vpop.f32.mrf.mxu0 }
 0x27a   : > { %1285 = vmatmul.mubr.msk.f32.vlgmr.msra.gmra.mxu0 %vm348_vm1, %v579_v36 }
 0x27b   : > { %1016 = vmatpush1.msra.mxu0 %v758_v20  ;;  %v1328_v38 = vpop.f32.mrf.mxu1  ;;  %v1338_v39 = vpop.f32.mrf.mxu0  ;;  %1055 = vmatprep.mubr.f32.mxu0 %v1632_v0 }
 0x27c   : > { %1017 = vmatprep.subr.mxu0 %v757_v21 }
 0x27d   : > { %1018 = vmatpush1.msra.mxu0 %v756_v24  ;;  %v661_v40 = vpop.f32.mrf.mxu1 }
 0x27e   : > { %1019 = vmatprep.subr.mxu0 %v755_v26  ;;  %1286 = vmatmul.mubr.msk.f32.vlgmr.msra.gmra.mxu1 %vm348_vm1, %v661_v40 }
 0x27f   : > { %1020 = vmatpush1.msra.mxu0 %v754_v27  ;;  %v1333_v41 = vpop.f32.mrf.mxu1 }
 0x280   : > { %1021 = vmatprep.subr.mxu0 %v753_v29 }
 0x281   : > { %1022 = vmatpush1.msra.mxu0 %v752_v31 }
 0x282   : > { %1287 = vmatmul.mubr.msk.f32.vlgmr.msra.gmra.mxu0 %vm348_vm1, %v742_v37 }
 0x2c8   : > { %v829_v43 = vpop.f32.mrf.mxu1 }
 0x2c9   : > { %v830_v57 = vadd.f32 %v829_v43, %v507_v42 }
 0x2ca   : > { %v831_v45 = vpop.f32.mrf.mxu1 }
 0x2cb   : > { %v832_v53 = vadd.f32 %v831_v45, %v507_v42 }
 0x33a   : > { %v905_v46 = vpop.f32.mrf.mxu0 }
 0x33b   : > { %v906_v59 = vadd.f32 %v905_v46, %v589_v56 }
 0x33c   : > { %v907_v48 = vpop.f32.mrf.mxu0 }
 0x33d   : > { %v908_v60 = vadd.f32 %v907_v48, %v589_v56 }
 0x33e   : > { %v981_v47 = vpop.f32.mrf.mxu1 }
 0x33f   : > { %v982_v54 = vadd.f32 %v981_v47, %v670_v44 }
 0x340   : > { %v983_v49 = vpop.f32.mrf.mxu1 }
 0x341   : > { %v984_v50 = vadd.f32 %v983_v49, %v670_v44  ;;  %v1072_v63 = vmax.f32 %v830_v57, %v982_v54 }
 0x342   : > { %v1057_v52 = vpop.f32.mrf.mxu0 }
 0x343   : > { %v1058_v55 = vadd.f32 %v1057_v52, %v751_v51  ;;  %v1073_v61 = vmax.f32 %v832_v53, %v984_v50 }
 0x344   : > { %v1059_v58 = vpop.f32.mrf.mxu0 }
 0x345   : > { %v1060_v62 = vadd.f32 %v1059_v58, %v751_v51  ;;  %v1074_v0 = vmax.f32 %v906_v59, %v1058_v55  ;;  %v1076_v2 = vmax.f32 %v1072_v63, %v1073_v61 }
 0x347   : > { %v1075_v1 = vmax.f32 %v908_v60, %v1060_v62 }
 0x349   : > { %v1077_v3 = vmax.f32 %v1074_v0, %v1075_v1 }
 0x34b   : > { %v1078_v4 = vmax.f32 %v1076_v2, %v1077_v3 }
 0x34d   : > { %1079 = vmax.xlane.f32.xlu1 %v1078_v4 }
 0x3d6   : > { %v1080_v5 = vpop.xlane.xlu1 %1079 }
 0x3d7   : > { %v1081_v6 = vsub.f32 %v830_v57, %v1080_v5  ;;  %v1082_v7 = vsub.f32 %v832_v53, %v1080_v5  ;;  %v1083_v8 = vsub.f32 %v906_v59, %v1080_v5  ;;  %v1084_v9 = vsub.f32 %v908_v60, %v1080_v5 }
 0x3d8   : > { %v1085_v12 = vsub.f32 %v982_v54, %v1080_v5  ;;  %v1086_v14 = vsub.f32 %v984_v50, %v1080_v5  ;;  %v1087_v16 = vsub.f32 %v1058_v55, %v1080_v5  ;;  %v1088_v18 = vsub.f32 %v1060_v62, %v1080_v5 }
 0x3d9   : > { %v1089_v10 = vmul.f32 1.442695, %v1081_v6  ;;  %v1091_v11 = vmul.f32 1.442695, %v1082_v7  ;;  %v1093_v13 = vmul.f32 1.442695, %v1083_v8 }
 0x3da   : > { %v1095_v15 = vmul.f32 1.442695, %v1084_v9  ;;  %v1097_v17 = vmul.f32 1.442695, %v1085_v12  ;;  %v1099_v19 = vmul.f32 1.442695, %v1086_v14 }
 0x3db   : > { %1420 = vpow2.f32 %v1089_v10  ;;  %v1101_v20 = vmul.f32 1.442695, %v1087_v16  ;;  %v1103_v21 = vmul.f32 1.442695, %v1088_v18 }
 0x3dc   : > { %1422 = vpow2.f32 %v1091_v11 }
 0x3dd   : > { %1424 = vpow2.f32 %v1093_v13 }
 0x3de   : > { %1426 = vpow2.f32 %v1095_v15 }
 0x3df   : > { %1428 = vpow2.f32 %v1097_v17 }
 0x3e0   : > { %1430 = vpow2.f32 %v1099_v19 }
 0x3e1   : > { %1432 = vpow2.f32 %v1101_v20 }
 0x3e2   : > { %1434 = vpow2.f32 %v1103_v21 }
 0x3e8   : > { %v1421_v22 = vpop.eup %1420 }
 0x3e9   : > { %v1423_v23 = vpop.eup %1422 }
 0x3ea   : > { %v1105_v24 = vadd.f32 %v1423_v23, %v1421_v22  ;;  %v1425_v25 = vpop.eup %1424 }
 0x3eb   : > { %v1427_v27 = vpop.eup %1426 }
 0x3ec   : > { %v1106_v26 = vadd.f32 %v1425_v25, %v1105_v24  ;;  %v1429_v29 = vpop.eup %1428 }
 0x3ed   : > { %v1431_v31 = vpop.eup %1430 }
 0x3ee   : > { %v1107_v28 = vadd.f32 %v1427_v27, %v1106_v26  ;;  %v1433_v33 = vpop.eup %1432 }
 0x3ef   : > { %v1435_v35 = vpop.eup %1434 }
 0x3f0   : > { %v1108_v30 = vadd.f32 %v1429_v29, %v1107_v28 }
 0x3f2   : > { %v1109_v32 = vadd.f32 %v1431_v31, %v1108_v30 }
 0x3f4   : > { %v1110_v34 = vadd.f32 %v1433_v33, %v1109_v32 }
 0x3f6   : > { %v1111_v36 = vadd.f32 %v1435_v35, %v1110_v34 }
 0x3f8   : > { %1112 = vadd.xlane.f32.xlu0 %v1111_v36 }
 0x481   : > { %v1113_v37 = vpop.xlane.xlu0 %1112 }
 0x482   : > { %1436 = vrcp.f32 %v1113_v37 }
 0x48f   : > { %v1437_v38 = vpop.eup %1436 }
 0x490   : > { %v1115_v39 = vmul.f32 %v1437_v38, %v1113_v37 }
 0x492   : > { %v1116_v40 = vsub.f32 2.0, %v1115_v39 }
 0x494   : > { %v1117_v41 = vmul.f32 %v1437_v38, %v1116_v40 }
 0x496   : > { %v1118_v42 = vmul.f32 %v1421_v22, %v1117_v41  ;;  %v1119_v43 = vmul.f32 %v1423_v23, %v1117_v41  ;;  %v1120_v44 = vmul.f32 %v1425_v25, %v1117_v41  ;;  %v1121_v45 = vmul.f32 %v1427_v27, %v1117_v41 }
 0x497   : > { %v1122_v46 = vmul.f32 %v1429_v29, %v1117_v41  ;;  %v1123_v47 = vmul.f32 %v1431_v31, %v1117_v41  ;;  %v1124_v48 = vmul.f32 %v1433_v33, %v1117_v41  ;;  %v1125_v49 = vmul.f32 %v1435_v35, %v1117_v41 }
 0x498   : > { %1126 = vst [vmem:[%s335_s10] sm:$0xff] %v1118_v42  ;;  %1127 = vst [vmem:[%s335_s10 + $0x8] sm:$0xff] %v1119_v43 }
 0x499   : > { %1128 = vst [vmem:[%s335_s10 + $0x10] sm:$0xff] %v1120_v44  ;;  %1129 = vst [vmem:[%s335_s10 + $0x18] sm:$0xff] %v1121_v45 }
 0x49a   : > { %1130 = vst [vmem:[%s335_s10 + $0x20] sm:$0xff] %v1122_v46  ;;  %1131 = vst [vmem:[%s335_s10 + $0x28] sm:$0xff] %v1123_v47 }
 0x49b   : > { %1132 = vst [vmem:[%s335_s10 + $0x30] sm:$0xff] %v1124_v48  ;;  %1133 = vst [vmem:[%s335_s10 + $0x38] sm:$0xff] %v1125_v49 }
 0x49c   : > { %1559 = shalt.err (!%p1556_p3)
}
 0x49d   : > { %s1560_s18 = scalar_lea.hbm %s1927_s0, 1024  ;;  %s1564_s11 = scalar_lea.hbm %s1976_s6, 2048 }
 0x49e   : > { %p1561_p2 = scmp.ne.s32.totalorder %s1927_s0, %s1560_s18  ;;  %p1565_p11 = scmp.lt.s32.totalorder %s1927_s0, %s1976_s6 }
 0x49f   : > { %p1566_p10 = scmp.lt.s32.totalorder %s1564_s11, %s1560_s18 }
 0x4a0   : > { %p1562_p0 = pnand %p1561_p2, %p1998_p7 }
 0x4a1   : > { %p1567_p6 = por %p1566_p10, %p1565_p11 }
 0x4a2   : > { %p1563_p8 = pneg %p1562_p0 }
 0x4a4   : > { %p1568_p12 = pnand %p1567_p6, %p1563_p8 }
 0x4a6   : > { %1571 = shalt.err (!%p1568_p12)
}
 0x4a7   : > { %1351 = dma.vmem_to_hbm [thread:$0]  (%p1998_p7), %s1929_s13, 1024, %s1927_s0, %s1135_s25  }
 0x4a8 PF: > { %s1161_s17 = sand.u32 1, %s1610_s21   ;;  %p1999_p9 = scmp.ne.s32.totalorder %s1983_s28, 0 }
 0x4a9   : > { %p2000_p13 = scmp.ge.s32.totalorder %s1622_s24, 2  ;;  %s1162_s2 = scalar_lea.sflag [#allocation5], %s1161_s17 }
 0x4ab   : > { %p1368_p5 = pnand %p2000_p13, %p1999_p9 }
 0x4ad   : > { %p1369_p1 = pneg %p1368_p5 }
 0x4af   : > { %1605 = dma.done.wait (%p1369_p1), %s1162_s2, 1024  }
 0x4b0   : > { %1607 = vsyncadd (%p1369_p1), %s1162_s2, 4294966272  ;;  %p23_p4 = scmp.ge.s32.totalorder %s1745_s19, 4   ;;  %s2001_s21 = smov %s1614_s22 }
 0x4b1   : > { %s2002_s22 = smov %s1618_s23  ;;  %s2003_s23 = smov %s1761_s7 }
 0x4b2   : > { %s2004_s24 = smov %s1745_s19  ;;  %25 = sbr.rel (!%p23_p4) target bundleno = 11 (0xb), region = 110 }
 0x4b7   :  { %1167 = vsyncpa [#allocation4], 1 }
 0x4b8   :  { %1169 = vsyncpa [#allocation4 + $0x1], 1 }
 0x4b9   :  { %1170 = vsyncpa [#allocation7], 1 }
 0x4ba   :  { %1172 = vsyncpa [#allocation7 + $0x1], 1 }
 0x4bb   :  { %1173 = vsyncpa [#allocation10], 1 }
 0x4bc   :  { %1174 = vsyncpa [#allocation5], 1 }
 0x4bd   :  { %1176 = vsyncpa [#allocation5 + $0x1], 1 }

</bundles_post_ra>
